<compile_context>
chip_gen: v7x
topology: tpu7x:2x2x1
jax: 0.10.0
libtpu: 0.0.40
codegen_flags: <defaults>
</compile_context>

<pallas_src>
import jax
import jax.numpy as jnp
from jax.experimental import pallas as pl
from jax.experimental.pallas import tpu as pltpu


def learned_dw_conv_forward(x, dw_weight, mask_dw, *, cardinality, stride=1,
                            padding=1, compute_dtype=jnp.bfloat16):
    """Forward of Learned_Dw_Conv for global_progress < 45 (masked grouped conv).

    x:         (N, Cin, H, W)          float32, NCHW
    dw_weight: (Cout, Cin//G, KH, KW)  grouped-conv weight, PyTorch OIHW layout
    mask_dw:   same shape as dw_weight
    """
    N, Cin, H, W = x.shape
    Cout, Cin_g, KH, KW = dw_weight.shape
    assert Cout % cardinality == 0
    G = Cout // cardinality                       # = self.group
    assert Cin % G == 0 and Cin // G == Cin_g
    Cout_g = Cout // G                            # = cardinality
    Hp, Wp = H + 2 * padding, W + 2 * padding
    Ho = (H + 2 * padding - KH) // stride + 1
    Wo = (W + 2 * padding - KW) // stride + 1
    Hd, Wd = Hp - KH + 1, Wp - KW + 1             # dense (stride-1) extents
    T = KH * KW

    # Per-image segment length: lane-dense (multiple of 128) and >= Hp*Wp so
    # that every useful output column reads only its own segment's data.
    Q = ((max(Hd * Wp, Hp * Wp) + 127) // 128) * 128
    assert Q >= Hp * Wp, "segment length must cover the padded image"
    NQ = N * Q
    max_off = (KH - 1) * Wp + (KW - 1)            # largest static tap offset
    L = NQ + max_off                              # folded flat-input length

    # ---- glue: zero-pad + flatten + fold batch into lanes (~1x input bytes) ----
    x = x.astype(jnp.float32)
    x_pad = jnp.pad(x, ((0, 0), (0, 0), (padding, padding), (padding, padding)))
    x_seg = jnp.pad(x_pad.reshape(N, Cin, Hp * Wp),
                    ((0, 0), (0, 0), (0, Q - Hp * Wp)))          # (N, Cin, Q)
    x_fold = x_seg.transpose(1, 0, 2).reshape(Cin, NQ)           # (Cin, N*Q)
    x_fold = jnp.pad(x_fold, ((0, 0), (0, max_off)))             # (Cin, L)

    # ---- pre-masked, block-diagonal weight, flattened to (Cout, T*Cin) ----
    w = (dw_weight * mask_dw).astype(jnp.float32)                # mask folded once
    w_taps = w.transpose(2, 3, 0, 1).reshape(T, Cout, Cin_g)     # t = kh*KW + kw
    bd_mask = ((jnp.arange(Cout)[:, None] // Cout_g)
               == (jnp.arange(Cin)[None, :] // Cin_g)).astype(jnp.float32)
    w_bd = w_taps[:, :, jnp.arange(Cin) % Cin_g] * bd_mask[None]  # (T, Cout, Cin)
    w_flat = (w_bd.transpose(1, 0, 2)                             # (Cout, T, Cin)
              .reshape(Cout, T * Cin).astype(compute_dtype))      # col = t*Cin+ci

    tap_offsets = tuple(kh * Wp + kw for kh in range(KH) for kw in range(KW))

    dot_kwargs = {}
    if jnp.dtype(compute_dtype) == jnp.dtype(jnp.float32):
        # full-f32 path: force true f32 matmul to match the reference conv
        dot_kwargs = dict(precision=jax.lax.Precision.HIGHEST)

    def kernel(x_ref, w_ref, o_ref, stack_ref):
        # x_ref:     (Cin, L)       f32 folded zero-padded images (VMEM)
        # w_ref:     (Cout, T*Cin)  pre-masked block-diagonal weight
        # o_ref:     (Cout, NQ)     dense stride-1 conv output, row stride = Wp
        # stack_ref: (T*Cin, NQ)    f32 scratch: in-VMEM "im2col" of the 9 taps
        for t, off in enumerate(tap_offsets):     # static unroll over 9 taps
            stack_ref[t * Cin:(t + 1) * Cin, :] = x_ref[:, off:off + NQ]
        x_stack = stack_ref[...].astype(compute_dtype)
        o_ref[...] = jax.lax.dot_general(          # single K = T*Cin matmul
            w_ref[...], x_stack, (((1,), (0,)), ((), ())),
            preferred_element_type=jnp.float32, **dot_kwargs
        ).astype(o_ref.dtype)

    w_itemsize = jnp.dtype(compute_dtype).itemsize
    cost = pl.CostEstimate(
        flops=2 * N * T * Cout * Cin_g * Ho * Wo,         # true grouped-conv MACs
        transcendentals=0,
        bytes_accessed=(Cin * L * 4 + Cout * T * Cin * w_itemsize + Cout * NQ * 4))

    out = pl.pallas_call(
        kernel,
        out_shape=jax.ShapeDtypeStruct((Cout, NQ), jnp.float32),
        grid=(1,),
        in_specs=[
            pl.BlockSpec((Cin, L), lambda i: (0, 0)),
            pl.BlockSpec((Cout, T * Cin), lambda i: (0, 0)),
        ],
        out_specs=pl.BlockSpec((Cout, NQ), lambda i: (0, 0)),
        scratch_shapes=[pltpu.VMEM((T * Cin, NQ), jnp.float32)],
        compiler_params=pltpu.CompilerParams(dimension_semantics=("arbitrary",)),
        cost_estimate=cost,
    )(x_fold, w_flat)

    # crop the dense padded-stride layout back to (N, Cout, Ho, Wo)
    y = out.reshape(Cout, N, Q).transpose(1, 0, 2)[:, :, :Hd * Wp]
    y = y.reshape(N, Cout, Hd, Wp)[:, :, :, :Wd]
    # stride applied by subsampling the dense result (exact for stride=1; for
    # stride>1 restrict the kernel's output columns instead to avoid ~s^2 waste)
    y = y[:, :, ::stride, ::stride][:, :, :Ho, :Wo]
    return y.astype(x.dtype)


if __name__ == "__main__":
    # Module config: Learned_Dw_Conv(in_ch=4, out_ch=8, 3, stride=1, padding=1,
    #                                dropout_rate=0, k=2, cardinality=4)
    in_channels, out_channels = 4, 8
    cardinality, k = 4, 2
    fiter_kernel, stride, padding = 3, 1, 1
    N, H, W = 2, 16, 16
    group = out_channels // cardinality

    key = jax.random.PRNGKey(0)
    kx, kw = jax.random.split(key)
    x = jax.random.normal(kx, (N, in_channels, H, W), dtype=jnp.float32)
    dw_weight = 0.1 * jax.random.normal(
        kw, (out_channels, in_channels // group, fiter_kernel, fiter_kernel),
        dtype=jnp.float32)
    mask_dw = jnp.ones_like(dw_weight)   # _mask_dw buffer is all ones at progress 0

    # TODO(synk): training-time pruning bookkeeping (_check_drop/_dropping_group,
    # index/_count buffers, progress>=45 dwconv2/pwconv branch, ldw_loss) is
    # stateful host logic outside the exercised forward path; not kernelized.

    y = learned_dw_conv_forward(x, dw_weight, mask_dw,
                                cardinality=cardinality, stride=stride,
                                padding=padding)
    y = jax.block_until_ready(y)

    # Reference: XLA grouped conv (same semantics as F.conv2d(..., groups=G)).
    # The kernel feeds the MXU bf16 operands with f32 accumulation, so compare
    # against the conv of identically bf16-rounded inputs: products are exact
    # in f32 on both sides, only the f32 accumulation order differs.
    wm = dw_weight * mask_dw
    x_r = x.astype(jnp.bfloat16).astype(jnp.float32)
    w_r = wm.astype(jnp.bfloat16).astype(jnp.float32)
    ref = jax.lax.conv_general_dilated(
        x_r, w_r,
        window_strides=(stride, stride),
        padding=((padding, padding), (padding, padding)),
        dimension_numbers=("NCHW", "OIHW", "NCHW"),
        feature_group_count=group,
        precision=jax.lax.Precision.HIGHEST)
    assert y.shape == ref.shape == (N, out_channels, H, W)
    assert jnp.allclose(y, ref, atol=1e-4, rtol=1e-4)
    print("KERNEL_OK")
</pallas_src>

<mosaic_0001>
module attributes {stable_mosaic.version = 11 : i64} {
  func.func @kernel(%arg0: i32, %arg1: memref<4x806xf32, #tpu.memory_space<vmem>>, %arg2: memref<8x36xbf16, #tpu.memory_space<vmem>>, %arg3: memref<8x768xf32, #tpu.memory_space<vmem>>, %arg4: memref<36x768xf32, #tpu.memory_space<vmem>>) attributes {dimension_semantics = [#tpu.dimension_semantics<arbitrary>], iteration_bounds = array<i64: 1>, scalar_prefetch = 0 : i64, scratch_operands = 1 : i64, tpu.core_type = #tpu.core_type<tc>, window_params = [{pipeline_mode = #tpu.pipeline_mode<synchronous>, transform_indices = @transform_0, window_bounds = array<i64: 4, 806>}, {pipeline_mode = #tpu.pipeline_mode<synchronous>, transform_indices = @transform_1, window_bounds = array<i64: 8, 36>}, {pipeline_mode = #tpu.pipeline_mode<synchronous>, transform_indices = @transform_2, window_bounds = array<i64: 8, 768>}]} {
    %c0 = arith.constant 0 : index
    %c0_0 = arith.constant 0 : index
    %0 = vector.load %arg1[%c0, %c0_0] : memref<4x806xf32, #tpu.memory_space<vmem>>, vector<4x768xf32>
    %c0_1 = arith.constant 0 : index
    %c0_2 = arith.constant 0 : index
    %1 = vector.load %arg4[%c0_1, %c0_2] : memref<36x768xf32, #tpu.memory_space<vmem>>, vector<4x768xf32>
    tpu.vector_store %arg4[%c0_1, %c0_2], %0 {strides = array<i32>} : memref<36x768xf32, #tpu.memory_space<vmem>>, vector<4x768xf32>,
    %c0_3 = arith.constant 0 : index
    %c1 = arith.constant 1 : index
    %2 = vector.load %arg1[%c0_3, %c1] : memref<4x806xf32, #tpu.memory_space<vmem>>, vector<4x768xf32>
    %c4 = arith.constant 4 : index
    %c0_4 = arith.constant 0 : index
    %3 = vector.load %arg4[%c4, %c0_4] : memref<36x768xf32, #tpu.memory_space<vmem>>, vector<4x768xf32>
    tpu.vector_store %arg4[%c4, %c0_4], %2 {strides = array<i32>} : memref<36x768xf32, #tpu.memory_space<vmem>>, vector<4x768xf32>,
    %c0_5 = arith.constant 0 : index
    %c2 = arith.constant 2 : index
    %4 = vector.load %arg1[%c0_5, %c2] : memref<4x806xf32, #tpu.memory_space<vmem>>, vector<4x768xf32>
    %c8 = arith.constant 8 : index
    %c0_6 = arith.constant 0 : index
    %5 = vector.load %arg4[%c8, %c0_6] : memref<36x768xf32, #tpu.memory_space<vmem>>, vector<4x768xf32>
    tpu.vector_store %arg4[%c8, %c0_6], %4 {strides = array<i32>} : memref<36x768xf32, #tpu.memory_space<vmem>>, vector<4x768xf32>,
    %c0_7 = arith.constant 0 : index
    %c18 = arith.constant 18 : index
    %6 = vector.load %arg1[%c0_7, %c18] : memref<4x806xf32, #tpu.memory_space<vmem>>, vector<4x768xf32>
    %c12 = arith.constant 12 : index
    %c0_8 = arith.constant 0 : index
    %7 = vector.load %arg4[%c12, %c0_8] : memref<36x768xf32, #tpu.memory_space<vmem>>, vector<4x768xf32>
    tpu.vector_store %arg4[%c12, %c0_8], %6 {strides = array<i32>} : memref<36x768xf32, #tpu.memory_space<vmem>>, vector<4x768xf32>,
    %c0_9 = arith.constant 0 : index
    %c19 = arith.constant 19 : index
    %8 = vector.load %arg1[%c0_9, %c19] : memref<4x806xf32, #tpu.memory_space<vmem>>, vector<4x768xf32>
    %c16 = arith.constant 16 : index
    %c0_10 = arith.constant 0 : index
    %9 = vector.load %arg4[%c16, %c0_10] : memref<36x768xf32, #tpu.memory_space<vmem>>, vector<4x768xf32>
    tpu.vector_store %arg4[%c16, %c0_10], %8 {strides = array<i32>} : memref<36x768xf32, #tpu.memory_space<vmem>>, vector<4x768xf32>,
    %c0_11 = arith.constant 0 : index
    %c20 = arith.constant 20 : index
    %10 = vector.load %arg1[%c0_11, %c20] : memref<4x806xf32, #tpu.memory_space<vmem>>, vector<4x768xf32>
    %c20_12 = arith.constant 20 : index
    %c0_13 = arith.constant 0 : index
    %11 = vector.load %arg4[%c20_12, %c0_13] : memref<36x768xf32, #tpu.memory_space<vmem>>, vector<4x768xf32>
    tpu.vector_store %arg4[%c20_12, %c0_13], %10 {strides = array<i32>} : memref<36x768xf32, #tpu.memory_space<vmem>>, vector<4x768xf32>,
    %c0_14 = arith.constant 0 : index
    %c36 = arith.constant 36 : index
    %12 = vector.load %arg1[%c0_14, %c36] : memref<4x806xf32, #tpu.memory_space<vmem>>, vector<4x768xf32>
    %c24 = arith.constant 24 : index
    %c0_15 = arith.constant 0 : index
    %13 = vector.load %arg4[%c24, %c0_15] : memref<36x768xf32, #tpu.memory_space<vmem>>, vector<4x768xf32>
    tpu.vector_store %arg4[%c24, %c0_15], %12 {strides = array<i32>} : memref<36x768xf32, #tpu.memory_space<vmem>>, vector<4x768xf32>,
    %c0_16 = arith.constant 0 : index
    %c37 = arith.constant 37 : index
    %14 = vector.load %arg1[%c0_16, %c37] : memref<4x806xf32, #tpu.memory_space<vmem>>, vector<4x768xf32>
    %c28 = arith.constant 28 : index
    %c0_17 = arith.constant 0 : index
    %15 = vector.load %arg4[%c28, %c0_17] : memref<36x768xf32, #tpu.memory_space<vmem>>, vector<4x768xf32>
    tpu.vector_store %arg4[%c28, %c0_17], %14 {strides = array<i32>} : memref<36x768xf32, #tpu.memory_space<vmem>>, vector<4x768xf32>,
    %c0_18 = arith.constant 0 : index
    %c38 = arith.constant 38 : index
    %16 = vector.load %arg1[%c0_18, %c38] : memref<4x806xf32, #tpu.memory_space<vmem>>, vector<4x768xf32>
    %c32 = arith.constant 32 : index
    %c0_19 = arith.constant 0 : index
    %17 = vector.load %arg4[%c32, %c0_19] : memref<36x768xf32, #tpu.memory_space<vmem>>, vector<4x768xf32>
    tpu.vector_store %arg4[%c32, %c0_19], %16 {strides = array<i32>} : memref<36x768xf32, #tpu.memory_space<vmem>>, vector<4x768xf32>,
    %c0_20 = arith.constant 0 : index
    %c0_21 = arith.constant 0 : index
    %18 = vector.load %arg4[%c0_20, %c0_21] : memref<36x768xf32, #tpu.memory_space<vmem>>, vector<36x768xf32>
    %19 = arith.truncf %18 : vector<36x768xf32> to vector<36x768xbf16>
    %c0_22 = arith.constant 0 : index
    %c0_23 = arith.constant 0 : index
    %20 = vector.load %arg2[%c0_22, %c0_23] : memref<8x36xbf16, #tpu.memory_space<vmem>>, vector<8x36xbf16>
    %cst = arith.constant dense<0.000000e+00> : vector<8x768xf32>
    %21 = tpu.matmul %20, %19, %cst {dimension_numbers = #tpu.dot_dimension_numbers<[1], [0], [0], [1], [0, 0, 1, 1], [], []>} : vector<8x36xbf16>, vector<36x768xbf16>, vector<8x768xf32> -> vector<8x768xf32>
    %c0_24 = arith.constant 0 : index
    %c0_25 = arith.constant 0 : index
    %22 = vector.load %arg3[%c0_24, %c0_25] : memref<8x768xf32, #tpu.memory_space<vmem>>, vector<8x768xf32>
    tpu.vector_store %arg3[%c0_24, %c0_25], %21 {strides = array<i32>} : memref<8x768xf32, #tpu.memory_space<vmem>>, vector<8x768xf32>,
    return
  }
  func.func @transform_0(%arg0: i32) -> (i32, i32) {
    %c0_i32 = arith.constant 0 : i32
    %c0_i32_0 = arith.constant 0 : i32
    %c0_i32_1 = arith.constant 0 : i32
    return %c0_i32, %c0_i32_0 : i32, i32
  }
  func.func @transform_1(%arg0: i32) -> (i32, i32) {
    %c0_i32 = arith.constant 0 : i32
    %c0_i32_0 = arith.constant 0 : i32
    %c0_i32_1 = arith.constant 0 : i32
    return %c0_i32, %c0_i32_0 : i32, i32
  }
  func.func @transform_2(%arg0: i32) -> (i32, i32) {
    %c0_i32 = arith.constant 0 : i32
    %c0_i32_0 = arith.constant 0 : i32
    %c0_i32_1 = arith.constant 0 : i32
    return %c0_i32, %c0_i32_0 : i32, i32
  }
}

</mosaic_0001>

<bundles_post_ra>
// kernel: tpu_custom_call.1
= control target key start
LH: loop header
LB: loop body
LE: loop exit
PB: predicated region body
PF: predicated region fallthrough
CT: control target
= control target key end

     0   :  { %7 = vsyncpa [#allocation4], 0  ;;  %s988_s0 = inlined_call_operand.hbm [shape: f32[4,806], index: 0, kind: input, shape index: {}]   ;;  %s989_s1 = inlined_call_operand.hbm [shape: bf16[8,36], index: 1, kind: input, shape index: {}]   ;;  %s990_s2 = inlined_call_operand.hbm [shape: f32[8,768], index: 2, kind: output, shape index: {}]  }
   0x1   :  { %8 = vsyncpa [#allocation7], 0 }
   0x2   :  { %9 = vsyncpa [#allocation5], 0  ;;  %s728_s9 = smov [#allocation3]   ;;  %s729_s11 = smov [#allocation6]  }
   0x3   :  { %s16_s10 = sshll.u32 %s728_s9, 4  ;;  %s26_s12 = sshll.u32 %s729_s11, 4  ;;  %s17_s10 = int_to_ptr.vmem [resolvable:$true] %s16_s10  ;;  %s27_s12 = int_to_ptr.vmem [resolvable:$true] %s26_s12 }
   0x4   :  { %s656_s15 = scalar_lea.hbm %s988_s0, 448 }
   0x5   :  { %p657_p0 = scmp.ne.s32.totalorder %s988_s0, %s656_s15  ;;  %p660_p1 = scmp.lt.u32.totalorder %s656_s15, %s988_s0 }
   0x7   :  { %p662_p2 = pnand %p660_p1, %p657_p0 }
   0x9   :  { %665 = shalt.err (!%p662_p2)
}
   0xa   :  { %s666_s20 = scalar_lea.vmem %s17_s10, 448  ;;  %p671_p4 = scmp.lt.s32.totalorder %s17_s10, %s17_s10 }
   0xb   :  { %p667_p3 = scmp.ne.s32.totalorder %s17_s10, %s666_s20  ;;  %p672_p5 = scmp.lt.s32.totalorder %s666_s20, %s666_s20 }
   0xd   :  { %p673_p6 = por %p672_p5, %p671_p4 }
   0xf   :  { %p674_p7 = pnand %p673_p6, %p667_p3 }
  0x11   :  { %677 = shalt.err (!%p674_p7)
}
  0x12   :  { %19 = dma.hbm_to_vmem [thread:$0]  %s988_s0, 448, %s17_s10, [#allocation4]  }
  0x13   :  { %s678_s25 = scalar_lea.hbm %s989_s1, 64 }
  0x14   :  { %p679_p8 = scmp.ne.s32.totalorder %s989_s1, %s678_s25  ;;  %p682_p9 = scmp.lt.u32.totalorder %s678_s25, %s989_s1 }
  0x16   :  { %p684_p10 = pnand %p682_p9, %p679_p8 }
  0x18   :  { %687 = shalt.err (!%p684_p10)
}
  0x19   :  { %s688_s30 = scalar_lea.vmem %s27_s12, 64  ;;  %p693_p12 = scmp.lt.s32.totalorder %s27_s12, %s27_s12 }
  0x1a   :  { %p689_p11 = scmp.ne.s32.totalorder %s27_s12, %s688_s30  ;;  %p694_p13 = scmp.lt.s32.totalorder %s688_s30, %s688_s30 }
  0x1c   :  { %p695_p0 = por %p694_p13, %p693_p12 }
  0x1e   :  { %p696_p1 = pnand %p695_p0, %p689_p11 }
  0x20   :  { %699 = shalt.err (!%p696_p1)
}
  0x21   :  { %29 = dma.hbm_to_vmem [thread:$0]  %s989_s1, 64, %s27_s12, [#allocation7]  }
  0x22   :  { %722 = dma.done.wait [#allocation4], 448  }
  0x23   :  { %723 = vsyncadd [#allocation4], 4294966848 }
  0x24   :  { %724 = dma.done.wait [#allocation7], 64  }
  0x25   :  { %725 = vsyncadd [#allocation7], 4294967232  ;;  %v779_v0 = vld [vmem:[#allocation3 + $0x8] sm:$0xff]  ;;  %v55_v1 = vld [vmem:[#allocation3] sm:$0xff]  ;;  %s730_s4 = smov 126   ;;  %s731_s5 = smov 127  }
  0x26   :  { %v781_v2 = vld [vmem:[#allocation3 + $0x10] sm:$0xff]  ;;  %115 = vrot.lane.b32.xlu1 %v779_v0, %s730_s4  ;;  %v787_v3 = vcombine.high %v779_v0, %v779_v0  ;;  %69 = vrot.lane.b32.xlu0 %v55_v1, %s731_s5  ;;  %v108_v4 = vcombine.high %v55_v1, %v55_v1  ;;  %49 = vst [vmem:[#allocation2] sm:$0xf] %v55_v1  ;;  %51 = vst [vmem:[#allocation2 + $0x10] sm:$0xf] %v779_v0  ;;  %s732_s1 = smov 110  }
  0x27   :  { %53 = vst [vmem:[#allocation2 + $0x20] sm:$0xf] %v781_v2  ;;  %v794_v5 = vcombine.high %v781_v2, %v781_v2  ;;  %v153_v6 = vcombine.low %v779_v0, %v779_v0  ;;  %v63_v7 = vcombine.low %v55_v1, %v55_v1  ;;  %s733_s6 = smov 109   ;;  %s734_s7 = smov 108   ;;  %v65_v8 = vcombine.low %v781_v2, %v781_v2  ;;  %v651_v9 = vld [vmem:[#allocation3 + $0x18] ss:$0 sps:$4 sm:$0xff]  }
  0x28   :  { %50 = vst [vmem:[#allocation2 + $0x8] sm:$0xf] %v108_v4  ;;  %52 = vst [vmem:[#allocation2 + $0x18] sm:$0xf] %v787_v3  ;;  %s735_s8 = smov 92   ;;  %s736_s9 = smov 91  }
  0x29   :  { %54 = vst [vmem:[#allocation2 + $0x28] sm:$0xf] %v794_v5  ;;  %s737_s10 = smov 90   ;;  %v103_v10 = vld [vmem:[#allocation3 + $0x18] sm:$0xf]  ;;  %v738_v12 = vmov 0  }
  0x2a   :  { %113 = vrot.lane.b32.xlu1 %v108_v4, %s730_s4  ;;  %158 = vrot.lane.b32.xlu0 %v55_v1, %s732_s1  ;;  %v653_v11 = vld [vmem:[#allocation3 + $0x18] ss:$0 sps:$4 sm:$0xff]   ;;  %vm125_vm0 = vcmask 1031168   ;;  %vm170_vm1 = vcmask 900096   ;;  %vm81_vm2 = vcmask 1039360   ;;  %vm214_vm3 = vcmask 891904  }
  0x2b   :  { %515 = vmatprep.mubr.bf16.mxu0 %v738_v12  ;;  %556 = vmatprep.mubr.bf16.mxu1 %v738_v12  ;;  %v192_v13 = vld [vmem:[#allocation3 + $0x18] sm:$0xf]  ;;  %vm259_vm4 = vcmask 883712   ;;  %vm303_vm5 = vcmask 752640   ;;  %vm348_vm6 = vcmask 744448   ;;  %vm392_vm7 = vcmask 736256  }
  0x2c   :  { %v654_v14 = vld [vmem:[#allocation3 + $0x18] ss:$0 sps:$4 sm:$0xff]   ;;  %vm464_vm8 = vcmask 1041408   ;;  %vm460_vm9 = vcmask 293888   ;;  %s739_s11 = smov [#allocation8]  }
  0x2d   :  { %v281_v15 = vld [vmem:[#allocation3 + $0x18] sm:$0xf]  ;;  %s618_s12 = sshll.u32 %s739_s11, 4  ;;  %s619_s12 = int_to_ptr.vmem [resolvable:$true] %s618_s12 }
  0x2e   :  { %160 = vrot.lane.b32.xlu1 %v153_v6, %s732_s1  ;;  %71 = vrot.lane.b32.xlu0 %v153_v6, %s731_s5  ;;  %v655_v16 = vld [vmem:[#allocation3 + $0x18] ss:$0 sps:$4 sm:$0xff]   ;;  %s700_s13 = scalar_lea.vmem %s619_s12, 768  ;;  %p705_p3 = scmp.lt.s32.totalorder %s619_s12, %s619_s12 }
  0x2f   :  { %v370_v17 = vld [vmem:[#allocation3 + $0x18] sm:$0xf]  ;;  %p701_p2 = scmp.ne.s32.totalorder %s619_s12, %s700_s13  ;;  %p706_p4 = scmp.lt.s32.totalorder %s700_s13, %s700_s13 }
  0x31   :  { %p707_p5 = por %p706_p4, %p705_p3 }
  0x32   :  { %111 = vrot.lane.b32.xlu1 %v55_v1, %s730_s4  ;;  %67 = vrot.lane.b32.xlu0 %v63_v7, %s731_s5 }
  0x33   :  { %p708_p6 = pnand %p707_p5, %p701_p2 }
  0x36   :  { %202 = vrot.lane.b32.xlu1 %v108_v4, %s733_s6  ;;  %156 = vrot.lane.b32.xlu0 %v63_v7, %s732_s1 }
  0x3a   :  { %247 = vrot.lane.b32.xlu1 %v55_v1, %s734_s7  ;;  %204 = vrot.lane.b32.xlu0 %v779_v0, %s733_s6 }
  0x3e   :  { %291 = vrot.lane.b32.xlu1 %v108_v4, %s735_s8  ;;  %249 = vrot.lane.b32.xlu0 %v153_v6, %s734_s7 }
  0x42   :  { %336 = vrot.lane.b32.xlu1 %v55_v1, %s736_s9  ;;  %293 = vrot.lane.b32.xlu0 %v779_v0, %s735_s8 }
  0x46   :  { %200 = vrot.lane.b32.xlu1 %v55_v1, %s733_s6  ;;  %338 = vrot.lane.b32.xlu0 %v153_v6, %s736_s9 }
  0x4a   :  { %289 = vrot.lane.b32.xlu1 %v55_v1, %s735_s8  ;;  %245 = vrot.lane.b32.xlu0 %v63_v7, %s734_s7 }
  0x4e   :  { %378 = vrot.lane.b32.xlu1 %v55_v1, %s737_s10  ;;  %334 = vrot.lane.b32.xlu0 %v63_v7, %s736_s9 }
  0x52   :  { %382 = vrot.lane.b32.xlu1 %v779_v0, %s737_s10  ;;  %380 = vrot.lane.b32.xlu0 %v108_v4, %s737_s10 }
  0x56   :  { %75 = vrot.lane.b32.xlu1 %v65_v8, %s731_s5  ;;  %73 = vrot.lane.b32.xlu0 %v779_v0, %s731_s5 }
  0x5a   :  { %79 = vrot.lane.b32.xlu1 %v651_v9, %s731_s5  ;;  %77 = vrot.lane.b32.xlu0 %v781_v2, %s731_s5 }
  0x5e   :  { %119 = vrot.lane.b32.xlu1 %v781_v2, %s730_s4  ;;  %117 = vrot.lane.b32.xlu0 %v787_v3, %s730_s4 }
  0x62   :  { %123 = vrot.lane.b32.xlu1 %v103_v10, %s730_s4  ;;  %121 = vrot.lane.b32.xlu0 %v794_v5, %s730_s4 }
  0x66   :  { %164 = vrot.lane.b32.xlu1 %v65_v8, %s732_s1  ;;  %162 = vrot.lane.b32.xlu0 %v779_v0, %s732_s1 }
  0x6a   :  { %168 = vrot.lane.b32.xlu1 %v653_v11, %s732_s1  ;;  %166 = vrot.lane.b32.xlu0 %v781_v2, %s732_s1 }
  0x6e   :  { %208 = vrot.lane.b32.xlu1 %v781_v2, %s733_s6  ;;  %206 = vrot.lane.b32.xlu0 %v787_v3, %s733_s6 }
  0x72   :  { %212 = vrot.lane.b32.xlu1 %v192_v13, %s733_s6  ;;  %210 = vrot.lane.b32.xlu0 %v794_v5, %s733_s6 }
  0x76   :  { %253 = vrot.lane.b32.xlu1 %v65_v8, %s734_s7  ;;  %251 = vrot.lane.b32.xlu0 %v779_v0, %s734_s7 }
  0x7a   :  { %257 = vrot.lane.b32.xlu1 %v654_v14, %s734_s7  ;;  %255 = vrot.lane.b32.xlu0 %v781_v2, %s734_s7 }
  0x7e   :  { %297 = vrot.lane.b32.xlu1 %v781_v2, %s735_s8  ;;  %295 = vrot.lane.b32.xlu0 %v787_v3, %s735_s8 }
  0x82   :  { %301 = vrot.lane.b32.xlu1 %v281_v15, %s735_s8  ;;  %299 = vrot.lane.b32.xlu0 %v794_v5, %s735_s8 }
  0x86   :  { %342 = vrot.lane.b32.xlu1 %v65_v8, %s736_s9  ;;  %340 = vrot.lane.b32.xlu0 %v779_v0, %s736_s9 }
  0x8a   :  { %346 = vrot.lane.b32.xlu1 %v655_v16, %s736_s9  ;;  %344 = vrot.lane.b32.xlu0 %v781_v2, %s736_s9 }
  0x8e   :  { %386 = vrot.lane.b32.xlu1 %v781_v2, %s737_s10  ;;  %384 = vrot.lane.b32.xlu0 %v787_v3, %s737_s10 }
  0x92   :  { %390 = vrot.lane.b32.xlu1 %v370_v17, %s737_s10  ;;  %388 = vrot.lane.b32.xlu0 %v794_v5, %s737_s10 }
  0x98   :  { %v881_v18 = vpop.permute.xlu1 %115  ;;  %v70_v19 = vpop.permute.xlu0 %69 }
  0x9c   :  { %v114_v20 = vpop.permute.xlu1 %113  ;;  %v159_v21 = vpop.permute.xlu0 %158 }
  0x9d   :  { %v127_v22 = vsel %vm125_vm0, %v114_v20, %v881_v18 }
  0x9e   :  { %139 = vst [vmem:[#allocation2 + $0x38] sm:$0xf] %v127_v22 }
  0xa0   :  { %v885_v23 = vpop.permute.xlu1 %160  ;;  %v887_v24 = vpop.permute.xlu0 %71 }
  0xa1   :  { %v172_v25 = vsel %vm170_vm1, %v159_v21, %v885_v23  ;;  %v83_v26 = vsel %vm81_vm2, %v70_v19, %v887_v24 }
  0xa2   :  { %184 = vst [vmem:[#allocation2 + $0x38] sm:$0xf0] %v172_v25  ;;  %95 = vst [vmem:[#allocation2 + $0x8] sm:$0xf0] %v83_v26  ;;  %v931_v26 = vld [vmem:[#allocation6] sm:$0xf] }
  0xa4   :  { %v112_v27 = vpop.permute.xlu1 %111  ;;  %v68_v28 = vpop.permute.xlu0 %67 }
  0xa5   :  { %v126_v29 = vsel %vm125_vm0, %v112_v27, %v114_v20  ;;  %v82_v30 = vsel %vm81_vm2, %v68_v28, %v70_v19 }
  0xa6   :  { %138 = vst [vmem:[#allocation2 + $0x30] sm:$0xf] %v126_v29  ;;  %94 = vst [vmem:[#allocation2] sm:$0xf0] %v82_v30 }
  0xa8   :  { %v203_v31 = vpop.permute.xlu1 %202  ;;  %v157_v32 = vpop.permute.xlu0 %156 }
  0xa9   :  { %v171_v33 = vsel %vm170_vm1, %v157_v32, %v159_v21  ;;  %v412_v34 = vld [vmem:[#allocation2 + $0x8] sm:$0xff]  ;;  %v418_v35 = vld [vmem:[#allocation2 + $0x38] sm:$0xff] }
  0xaa   :  { %183 = vst [vmem:[#allocation2 + $0x30] sm:$0xf0] %v171_v33  ;;  %v442_v36 = vpack.c.bf16 %v418_v35, %v412_v34 }
  0xac   :  { %v248_v37 = vpop.permute.xlu1 %247  ;;  %v896_v38 = vpop.permute.xlu0 %204  ;;  %483 = vmatprep.subr.bf16.mxu0 %v442_v36 }
  0xad   :  { %v216_v39 = vsel %vm214_vm3, %v203_v31, %v896_v38  ;;  %v411_v43 = vld [vmem:[#allocation2] sm:$0xff] }
  0xae   :  { %228 = vst [vmem:[#allocation2 + $0x68] sm:$0xf] %v216_v39 }
  0xb0   :  { %v292_v40 = vpop.permute.xlu1 %291  ;;  %v900_v41 = vpop.permute.xlu0 %249 }
  0xb1   :  { %v261_v42 = vsel %vm259_vm4, %v248_v37, %v900_v41  ;;  %v417_v44 = vld [vmem:[#allocation2 + $0x30] sm:$0xff] }
  0xb2   :  { %273 = vst [vmem:[#allocation2 + $0x68] sm:$0xf0] %v261_v42  ;;  %v441_v45 = vpack.c.bf16 %v417_v44, %v411_v43 }
  0xb4   :  { %v337_v46 = vpop.permute.xlu1 %336  ;;  %v904_v47 = vpop.permute.xlu0 %293  ;;  %484 = vmatpush1.bf16.msra.mxu0 %v441_v45 }
  0xb5   :  { %v305_v48 = vsel %vm303_vm5, %v292_v40, %v904_v47 }
  0xb6   :  { %317 = vst [vmem:[#allocation2 + $0x98] sm:$0xf] %v305_v48 }
  0xb8   :  { %v201_v49 = vpop.permute.xlu1 %200  ;;  %v908_v50 = vpop.permute.xlu0 %338 }
  0xb9   :  { %v215_v51 = vsel %vm214_vm3, %v201_v49, %v203_v31  ;;  %v350_v52 = vsel %vm348_vm6, %v337_v46, %v908_v50  ;;  %v424_v60 = vld [vmem:[#allocation2 + $0x68] sm:$0xff] }
  0xba   :  { %227 = vst [vmem:[#allocation2 + $0x60] sm:$0xf] %v215_v51  ;;  %362 = vst [vmem:[#allocation2 + $0x98] sm:$0xf0] %v350_v52 }
  0xbc   :  { %v290_v53 = vpop.permute.xlu1 %289  ;;  %v246_v54 = vpop.permute.xlu0 %245 }
  0xbd   :  { %v304_v55 = vsel %vm303_vm5, %v290_v53, %v292_v40  ;;  %v260_v56 = vsel %vm259_vm4, %v246_v54, %v248_v37 }
  0xbe   :  { %316 = vst [vmem:[#allocation2 + $0x90] sm:$0xf] %v304_v55  ;;  %272 = vst [vmem:[#allocation2 + $0x60] sm:$0xf0] %v260_v56 }
  0xc0   :  { %v379_v57 = vpop.permute.xlu1 %378  ;;  %v335_v58 = vpop.permute.xlu0 %334 }
  0xc1   :  { %v349_v59 = vsel %vm348_vm6, %v335_v58, %v337_v46  ;;  %v430_v61 = vld [vmem:[#allocation2 + $0x98] sm:$0xff] }
  0xc2   :  { %361 = vst [vmem:[#allocation2 + $0x90] sm:$0xf0] %v349_v59  ;;  %v448_v62 = vpack.c.bf16 %v430_v61, %v424_v60 }
  0xc4   :  { %v916_v63 = vpop.permute.xlu1 %382  ;;  %v381_v0 = vpop.permute.xlu0 %380  ;;  %485 = vmatprep.subr.bf16.mxu0 %v448_v62 }
  0xc5   :  { %v393_v1 = vsel %vm392_vm7, %v379_v57, %v381_v0  ;;  %v394_v2 = vsel %vm392_vm7, %v381_v0, %v916_v63  ;;  %v423_v7 = vld [vmem:[#allocation2 + $0x60] sm:$0xff] }
  0xc6   :  { %405 = vst [vmem:[#allocation2 + $0xc0] sm:$0xf] %v393_v1  ;;  %406 = vst [vmem:[#allocation2 + $0xc8] sm:$0xf] %v394_v2 }
  0xc8   :  { %v76_v3 = vpop.permute.xlu1 %75  ;;  %v74_v4 = vpop.permute.xlu0 %73 }
  0xc9   :  { %v84_v5 = vsel %vm81_vm2, %v887_v24, %v74_v4  ;;  %v85_v6 = vsel %vm81_vm2, %v74_v4, %v76_v3  ;;  %v429_v8 = vld [vmem:[#allocation2 + $0x90] sm:$0xff] }
  0xca   :  { %96 = vst [vmem:[#allocation2 + $0x10] sm:$0xf0] %v84_v5  ;;  %97 = vst [vmem:[#allocation2 + $0x18] sm:$0xf0] %v85_v6  ;;  %v447_v9 = vpack.c.bf16 %v429_v8, %v423_v7 }
  0xcc   :  { %v80_v10 = vpop.permute.xlu1 %79  ;;  %v78_v11 = vpop.permute.xlu0 %77  ;;  %486 = vmatpush1.bf16.msra.mxu0 %v447_v9 }
  0xcd   :  { %v86_v13 = vsel %vm81_vm2, %v76_v3, %v78_v11  ;;  %v87_v14 = vsel %vm81_vm2, %v78_v11, %v80_v10  ;;  %v436_v15 = vld [vmem:[#allocation2 + $0xc8] sm:$0xf]  ;;  %v435_v16 = vld [vmem:[#allocation2 + $0xc0] sm:$0xf] }
  0xce   :  { %98 = vst [vmem:[#allocation2 + $0x20] sm:$0xf0] %v86_v13  ;;  %99 = vst [vmem:[#allocation2 + $0x28] sm:$0xf0] %v87_v14  ;;  %v454_v17 = vpack.c.bf16 %v436_v15, %v436_v15  ;;  %v453_v19 = vpack.c.bf16 %v435_v16, %v435_v16 }
  0xd0   :  { %v120_v20 = vpop.permute.xlu1 %119  ;;  %v118_v21 = vpop.permute.xlu0 %117  ;;  %628 = vmatprep.subr.msk.bf16.mxu0 %vm464_vm8, %v454_v17  ;;  %v466_v22 = vsel %vm464_vm8, %v453_v19, 0 }
  0xd1   :  { %v128_v24 = vsel %vm125_vm0, %v881_v18, %v118_v21  ;;  %v129_v25 = vsel %vm125_vm0, %v118_v21, %v120_v20  ;;  %488 = vmatpush1.bf16.msra.mxu0 %v466_v22  ;;  %v414_v40 = vld [vmem:[#allocation2 + $0x18] sm:$0xff]  ;;  %v413_v44 = vld [vmem:[#allocation2 + $0x10] sm:$0xff] }
  0xd2   :  { %140 = vst [vmem:[#allocation2 + $0x40] sm:$0xf] %v128_v24  ;;  %141 = vst [vmem:[#allocation2 + $0x48] sm:$0xf] %v129_v25 }
  0xd4   :  { %v124_v27 = vpop.permute.xlu1 %123  ;;  %v122_v28 = vpop.permute.xlu0 %121  ;;  %629 = vmatmul.mubr.msk.bf16.vlgmr.msra.gmra.mrb[0].mxu0 %vm460_vm9, %v931_v26 }
  0xd5   :  { %v130_v29 = vsel %vm125_vm0, %v120_v20, %v122_v28  ;;  %v131_v30 = vsel %vm125_vm0, %v122_v28, %v124_v27  ;;  %597 = vmatprep.mubr.bf16.mxu0 %v738_v12  ;;  %v416_v52 = vld [vmem:[#allocation2 + $0x28] sm:$0xff] }
  0xd6   :  { %142 = vst [vmem:[#allocation2 + $0x50] sm:$0xf] %v130_v29  ;;  %143 = vst [vmem:[#allocation2 + $0x58] sm:$0xf] %v131_v30 }
  0xd8   :  { %v165_v18 = vpop.permute.xlu1 %164  ;;  %v163_v31 = vpop.permute.xlu0 %162 }
  0xd9   :  { %v173_v32 = vsel %vm170_vm1, %v885_v23, %v163_v31  ;;  %v174_v33 = vsel %vm170_vm1, %v163_v31, %v165_v18 }
  0xda   :  { %185 = vst [vmem:[#allocation2 + $0x40] sm:$0xf0] %v173_v32  ;;  %186 = vst [vmem:[#allocation2 + $0x48] sm:$0xf0] %v174_v33 }
  0xdc   :  { %v169_v34 = vpop.permute.xlu1 %168  ;;  %v167_v35 = vpop.permute.xlu0 %166 }
  0xdd   :  { %v175_v36 = vsel %vm170_vm1, %v165_v18, %v167_v35  ;;  %v176_v37 = vsel %vm170_vm1, %v167_v35, %v169_v34 }
  0xde   :  { %187 = vst [vmem:[#allocation2 + $0x50] sm:$0xf0] %v175_v36  ;;  %188 = vst [vmem:[#allocation2 + $0x58] sm:$0xf0] %v176_v37 }
  0xe0   :  { %v209_v12 = vpop.permute.xlu1 %208  ;;  %v207_v39 = vpop.permute.xlu0 %206 }
  0xe1   :  { %v217_v42 = vsel %vm214_vm3, %v896_v38, %v207_v39  ;;  %v218_v23 = vsel %vm214_vm3, %v207_v39, %v209_v12  ;;  %v420_v43 = vld [vmem:[#allocation2 + $0x48] sm:$0xff]  ;;  %v419_v45 = vld [vmem:[#allocation2 + $0x40] sm:$0xff] }
  0xe2   :  { %229 = vst [vmem:[#allocation2 + $0x70] sm:$0xf] %v217_v42  ;;  %230 = vst [vmem:[#allocation2 + $0x78] sm:$0xf] %v218_v23  ;;  %v444_v46 = vpack.c.bf16 %v420_v43, %v414_v40  ;;  %v443_v48 = vpack.c.bf16 %v419_v45, %v413_v44  ;;  %v415_v38 = vld [vmem:[#allocation2 + $0x20] sm:$0xff] }
  0xe4   :  { %v213_v49 = vpop.permute.xlu1 %212  ;;  %v211_v51 = vpop.permute.xlu0 %210  ;;  %524 = vmatprep.subr.bf16.mxu1 %v444_v46 }
  0xe5   :  { %v219_v53 = vsel %vm214_vm3, %v209_v12, %v211_v51  ;;  %v220_v54 = vsel %vm214_vm3, %v211_v51, %v213_v49  ;;  %525 = vmatpush1.bf16.msra.mxu1 %v443_v48  ;;  %v422_v55 = vld [vmem:[#allocation2 + $0x58] sm:$0xff]  ;;  %v421_v56 = vld [vmem:[#allocation2 + $0x50] sm:$0xff] }
  0xe6   :  { %231 = vst [vmem:[#allocation2 + $0x80] sm:$0xf] %v219_v53  ;;  %232 = vst [vmem:[#allocation2 + $0x88] sm:$0xf] %v220_v54  ;;  %v446_v57 = vpack.c.bf16 %v422_v55, %v416_v52  ;;  %v445_v58 = vpack.c.bf16 %v421_v56, %v415_v38 }
  0xe8   :  { %v254_v59 = vpop.permute.xlu1 %253  ;;  %v252_v60 = vpop.permute.xlu0 %251  ;;  %565 = vmatprep.subr.bf16.mxu0 %v446_v57 }
  0xe9   :  { %v262_v61 = vsel %vm259_vm4, %v900_v41, %v252_v60  ;;  %v263_v62 = vsel %vm259_vm4, %v252_v60, %v254_v59  ;;  %566 = vmatpush1.bf16.msra.mxu0 %v445_v58 }
  0xea   :  { %274 = vst [vmem:[#allocation2 + $0x70] sm:$0xf0] %v262_v61  ;;  %275 = vst [vmem:[#allocation2 + $0x78] sm:$0xf0] %v263_v62 }
  0xec   :  { %v258_v0 = vpop.permute.xlu1 %257  ;;  %v256_v1 = vpop.permute.xlu0 %255 }
  0xed   :  { %v264_v2 = vsel %vm259_vm4, %v254_v59, %v256_v1  ;;  %v265_v3 = vsel %vm259_vm4, %v256_v1, %v258_v0 }
  0xee   :  { %276 = vst [vmem:[#allocation2 + $0x80] sm:$0xf0] %v264_v2  ;;  %277 = vst [vmem:[#allocation2 + $0x88] sm:$0xf0] %v265_v3 }
  0xf0   :  { %v298_v4 = vpop.permute.xlu1 %297  ;;  %v296_v5 = vpop.permute.xlu0 %295 }
  0xf1   :  { %v306_v6 = vsel %vm303_vm5, %v904_v47, %v296_v5  ;;  %v307_v41 = vsel %vm303_vm5, %v296_v5, %v298_v4  ;;  %v426_v22 = vld [vmem:[#allocation2 + $0x78] sm:$0xff]  ;;  %v425_v27 = vld [vmem:[#allocation2 + $0x70] sm:$0xff] }
  0xf2   :  { %318 = vst [vmem:[#allocation2 + $0xa0] sm:$0xf] %v306_v6  ;;  %319 = vst [vmem:[#allocation2 + $0xa8] sm:$0xf] %v307_v41 }
  0xf4   :  { %v302_v7 = vpop.permute.xlu1 %301  ;;  %v300_v8 = vpop.permute.xlu0 %299 }
  0xf5   :  { %v308_v9 = vsel %vm303_vm5, %v298_v4, %v300_v8  ;;  %v309_v10 = vsel %vm303_vm5, %v300_v8, %v302_v7  ;;  %v428_v32 = vld [vmem:[#allocation2 + $0x88] sm:$0xff] }
  0xf6   :  { %320 = vst [vmem:[#allocation2 + $0xb0] sm:$0xf] %v308_v9  ;;  %321 = vst [vmem:[#allocation2 + $0xb8] sm:$0xf] %v309_v10 }
  0xf8   :  { %v343_v11 = vpop.permute.xlu1 %342  ;;  %v341_v13 = vpop.permute.xlu0 %340 }
  0xf9   :  { %v351_v14 = vsel %vm348_vm6, %v908_v50, %v341_v13  ;;  %v352_v15 = vsel %vm348_vm6, %v341_v13, %v343_v11 }
  0xfa   :  { %363 = vst [vmem:[#allocation2 + $0xa0] sm:$0xf0] %v351_v14  ;;  %364 = vst [vmem:[#allocation2 + $0xa8] sm:$0xf0] %v352_v15 }
  0xfc   :  { %v347_v47 = vpop.permute.xlu1 %346  ;;  %v345_v16 = vpop.permute.xlu0 %344 }
  0xfd   :  { %v353_v17 = vsel %vm348_vm6, %v343_v11, %v345_v16  ;;  %v354_v19 = vsel %vm348_vm6, %v345_v16, %v347_v47 }
  0xfe   :  { %365 = vst [vmem:[#allocation2 + $0xb0] sm:$0xf0] %v353_v17  ;;  %366 = vst [vmem:[#allocation2 + $0xb8] sm:$0xf0] %v354_v19 }
 0x100   :  { %v387_v20 = vpop.permute.xlu1 %386  ;;  %v385_v21 = vpop.permute.xlu0 %384 }
 0x101   :  { %v395_v24 = vsel %vm392_vm7, %v916_v63, %v385_v21  ;;  %v396_v50 = vsel %vm392_vm7, %v385_v21, %v387_v20  ;;  %v432_v25 = vld [vmem:[#allocation2 + $0xa8] sm:$0xff]  ;;  %v431_v28 = vld [vmem:[#allocation2 + $0xa0] sm:$0xff] }
 0x102   :  { %407 = vst [vmem:[#allocation2 + $0xd0] sm:$0xf] %v395_v24  ;;  %408 = vst [vmem:[#allocation2 + $0xd8] sm:$0xf] %v396_v50  ;;  %v450_v29 = vpack.c.bf16 %v432_v25, %v426_v22  ;;  %v449_v30 = vpack.c.bf16 %v431_v28, %v425_v27  ;;  %v427_v63 = vld [vmem:[#allocation2 + $0x80] sm:$0xff] }
 0x104   :  { %v391_v18 = vpop.permute.xlu1 %390  ;;  %v389_v31 = vpop.permute.xlu0 %388  ;;  %526 = vmatprep.subr.bf16.mxu1 %v450_v29 }
 0x105   :  { %v397_v33 = vsel %vm392_vm7, %v387_v20, %v389_v31  ;;  %v398_v34 = vsel %vm392_vm7, %v389_v31, %v391_v18  ;;  %527 = vmatpush1.bf16.msra.mxu1 %v449_v30  ;;  %v434_v35 = vld [vmem:[#allocation2 + $0xb8] sm:$0xff]  ;;  %v433_v36 = vld [vmem:[#allocation2 + $0xb0] sm:$0xff] }
 0x106   :  { %409 = vst [vmem:[#allocation2 + $0xe0] sm:$0xf] %v397_v33  ;;  %410 = vst [vmem:[#allocation2 + $0xe8] sm:$0xf] %v398_v34  ;;  %v452_v37 = vpack.c.bf16 %v434_v35, %v428_v32  ;;  %v451_v12 = vpack.c.bf16 %v433_v36, %v427_v63 }
 0x108   :  { %567 = vmatprep.subr.bf16.mxu0 %v452_v37 }
 0x109   :  { %568 = vmatpush1.bf16.msra.mxu0 %v451_v12  ;;  %v438_v39 = vld [vmem:[#allocation2 + $0xd8] sm:$0xf]  ;;  %v437_v40 = vld [vmem:[#allocation2 + $0xd0] sm:$0xf] }
 0x10a   :  { %v456_v42 = vpack.c.bf16 %v438_v39, %v438_v39  ;;  %v455_v23 = vpack.c.bf16 %v437_v40, %v437_v40 }
 0x10c   :  { %630 = vmatprep.subr.msk.bf16.mxu1 %vm464_vm8, %v456_v42  ;;  %v472_v43 = vsel %vm464_vm8, %v455_v23, 0 }
 0x10d   :  { %529 = vmatpush1.bf16.msra.mxu1 %v472_v43  ;;  %v440_v44 = vld [vmem:[#allocation2 + $0xe8] sm:$0xf]  ;;  %v439_v45 = vld [vmem:[#allocation2 + $0xe0] sm:$0xf] }
 0x10e   :  { %v458_v46 = vpack.c.bf16 %v440_v44, %v440_v44  ;;  %v457_v48 = vpack.c.bf16 %v439_v45, %v439_v45 }
 0x110   :  { %632 = vmatprep.subr.msk.bf16.mxu0 %vm464_vm8, %v458_v46  ;;  %631 = vmatmul.mubr.msk.bf16.vlgmr.msra.gmra.mrb[0].mxu1 %vm460_vm9, %v931_v26  ;;  %v478_v49 = vsel %vm464_vm8, %v457_v48, 0 }
 0x111   :  { %570 = vmatpush1.bf16.msra.mxu0 %v478_v49 }
 0x114   :  { %633 = vmatmul.mubr.msk.bf16.vlgmr.msra.gmra.mrb[4].mxu0 %vm460_vm9, %v931_v26 }
 0x1a7   :  { %v517_v51 = vpop.f32.mrb[0].mxu0 }
 0x1a8   :  { %606 = vst [vmem:[#allocation8] sm:$0xff] %v517_v51  ;;  %v519_v52 = vpop.f32.mrb[1].mxu0 }
 0x1a9   :  { %607 = vst [vmem:[#allocation8 + $0x8] sm:$0xff] %v519_v52  ;;  %v521_v53 = vpop.f32.mrb[2].mxu0 }
 0x1aa   :  { %v522_v54 = vpop.f32.mrb[3].mxu0 }
 0x1e3   :  { %v558_v55 = vpop.f32.mrb[0].mxu1 }
 0x1e4   :  { %608 = vst [vmem:[#allocation8 + $0x10] sm:$0xff] %v558_v55  ;;  %v560_v38 = vpop.f32.mrb[1].mxu1 }
 0x1e5   :  { %609 = vst [vmem:[#allocation8 + $0x18] sm:$0xff] %v560_v38  ;;  %v562_v56 = vpop.f32.mrb[2].mxu1 }
 0x1e6   :  { %v563_v57 = vpop.f32.mrb[3].mxu1 }
 0x1e7   :  { %v599_v58 = vpop.f32.mrb[4].mxu0 }
 0x1e8   :  { %610 = vst [vmem:[#allocation8 + $0x20] sm:$0xff] %v599_v58  ;;  %v601_v59 = vpop.f32.mrb[5].mxu0 }
 0x1e9   :  { %611 = vst [vmem:[#allocation8 + $0x28] sm:$0xff] %v601_v59  ;;  %v603_v26 = vpop.f32.mrb[6].mxu0 }
 0x1ea   :  { %v604_v60 = vpop.f32.mrb[7].mxu0 }
 0x1eb   :  { %711 = shalt.err (!%p708_p6)
}
 0x1ec   :  { %s712_s16 = scalar_lea.hbm %s990_s2, 768 }
 0x1ed   :  { %p713_p7 = scmp.ne.s32.totalorder %s990_s2, %s712_s16  ;;  %p716_p8 = scmp.lt.u32.totalorder %s712_s16, %s990_s2 }
 0x1ef   :  { %p718_p9 = pnand %p716_p8, %p713_p7 }
 0x1f1   :  { %721 = shalt.err (!%p718_p9)
}
 0x1f2   :  { %621 = dma.vmem_to_hbm [thread:$0]  %s619_s12, 768, %s990_s2, [#allocation5]  }
 0x1f3   :  { %726 = dma.done.wait [#allocation5], 768  }
 0x1f4   :  { %727 = vsyncadd [#allocation5], 4294966528 }
 0x1f5   :  { %625 = vsyncpa [#allocation4], 1 }
 0x1f6   :  { %626 = vsyncpa [#allocation7], 1 }
 0x1f7   :  { %627 = vsyncpa [#allocation5], 1 }

</bundles_post_ra>
